<compile_context>
chip_gen: v5e
topology: v5e:2x2
jax: 0.10.0
libtpu: 0.0.40
codegen_flags: <defaults>
</compile_context>

<pallas_src>
import jax
import jax.numpy as jnp
from jax.experimental import pallas as pl
from jax.experimental.pallas import tpu as pltpu


def _round_up(x, m):
    return (x + m - 1) // m * m


# ------------------------- fused mip-chain kernel ----------------------------

def _make_mip_chain_kernel(num_levels):
    """All mip levels in one kernel: X_{l+1} = 0.25 * A_l @ X_l @ B_l.

    Both matmuls run on the MXU against (8-sublane / 128-lane)-padded 0/1
    pooling operators, so no in-kernel relayout/transpose/gather is needed and
    every intermediate level stays in VMEM/vregs; only the level outputs are
    written back to HBM (once each)."""
    def kernel(*refs):
        env_ref = refs[0]
        a_refs = refs[1:1 + num_levels]
        b_refs = refs[1 + num_levels:1 + 2 * num_levels]
        out_refs = refs[1 + 2 * num_levels:]
        x = env_ref[...].astype(jnp.float32)
        for l in range(num_levels):                       # static unroll
            x = jnp.dot(a_refs[l][...], x, preferred_element_type=jnp.float32)
            x = jnp.dot(x, b_refs[l][...], preferred_element_type=jnp.float32)
            x = x * jnp.float32(0.25)
            out_refs[l][...] = x.astype(out_refs[l].dtype)
    return kernel


# ---------------------- fused shade + SMAPE loss kernel ----------------------

def _shade_loss_kernel(a_ref, t_ref, scale_ref, acc_ref):
    # a_ref/t_ref : (TR, 128) lane-dense image tiles (any dtype; upcast here)
    # scale_ref   : (8, 128)  kd * ambient pre-tiled to one full vreg
    # acc_ref     : (8, 128)  resident partial-sum accumulator (per grid row i)
    j = pl.program_id(1)

    @pl.when(j == 0)
    def _():
        acc_ref[...] = jnp.zeros_like(acc_ref)

    tr = a_ref.shape[0]
    # (TR,128) -> (TR//8, 8, 128): pure vreg regrouping (lane/sublane layout
    # unchanged), so the (8,128) scale broadcasts only along the vreg index.
    a = a_ref[...].astype(jnp.float32).reshape(tr // 8, 8, 128)
    t = t_ref[...].astype(jnp.float32).reshape(tr // 8, 8, 128)
    scale = scale_ref[...]

    # shade: rendered = albedo * (material_kd * ambient light color)
    rendered = a * scale
    # SMAPE image loss (nvdiffrec image_loss_fn); reciprocal rides the EUP slot.
    num = jnp.abs(rendered - t)
    den = jnp.abs(rendered) + jnp.abs(t) + jnp.float32(0.01)
    smape = num * pl.reciprocal(den, approx=True)
    # Fold into the resident (8,128) accumulator: pure VALU vreg adds, no
    # cross-lane/XLU reduce on the per-step critical path.
    acc_ref[...] += smape.sum(axis=0)


def _choose_tiling(rows, tile_rows, nsplit, align):
    """Pick (row_tile, padded_rows).  Prefers an exact divisor of `rows` so the
    lane-dense view is a pure reshape (no jnp.pad copy of the inputs)."""
    tile_cap = max(align, (tile_rows // align) * align)
    if rows % nsplit == 0:
        per = rows // nsplit
        if per % align == 0:
            cand = min(per, tile_cap)
            cand = (cand // align) * align
            while cand >= align:
                if per % cand == 0:
                    return cand, rows                     # no padding needed
                cand -= align
    # Ragged fallback: zero-pad (zeros contribute exactly 0 to the SMAPE sum
    # because num = 0 while den = 0.01).
    tr = min(tile_cap, max(align, _round_up(rows, align)))
    return tr, _round_up(rows, tr * nsplit)


def shade_and_image_loss(albedo, target_img, kd, ambient,
                         tile_rows=8192, nsplit=1):
    """Fused shading + SMAPE image loss, plus material regularizer.

    Inputs are consumed in their native dtype (feed bf16 renders/references to
    halve the HBM traffic of this bandwidth-bound kernel; it upcasts to f32
    internally).
    tile_rows: rows of 128 lanes per grid step.  8192 bf16 rows = 2 MiB per
      input (double-buffered), under every generation's VMEM limit and large
      enough that the ~0.35 us per-step overhead is <5-10%.
    nsplit: leading "parallel" grid axis.  Keep 1 on single-TensorCore chips
      (v5e/v6e); 2 can help v7x (2 TCs) — if plain "parallel" does not shard
      there, switch that axis to pltpu.CORE_PARALLEL.
    """
    B, H, W, C = albedo.shape
    assert 128 % C == 0, "channel count must divide 128 for lane-dense layout"
    assert target_img.shape == albedo.shape
    n_elems = B * H * W * C

    rows = pl.cdiv(n_elems, 128)
    min_itemsize = min(albedo.dtype.itemsize, target_img.dtype.itemsize)
    align = 8 * max(1, 4 // min_itemsize)          # sublane packing granularity
    tr, rows_pad = _choose_tiling(rows, tile_rows, nsplit, align)
    nblk = rows_pad // (tr * nsplit)

    def _to_lane_dense(x):
        flat = x.reshape(-1)
        pad = rows_pad * 128 - n_elems
        if pad:                                    # ragged-shape fallback only
            flat = jnp.pad(flat, (0, pad))
        return flat.reshape(rows_pad, 128)         # pure view when pad == 0

    a = _to_lane_dense(albedo)                     # native dtype; cast in-kernel
    t = _to_lane_dense(target_img)

    # Per-channel shading scale pre-tiled to one full (8,128) vreg: the channel
    # pattern repeats every 128 lanes since 128 % C == 0.
    row = jnp.tile((kd * ambient).astype(jnp.float32), 128 // C)
    scale_slab = jnp.tile(row[None, :], (8, 1))

    # Cover 2 inputs x 2 pipeline buffers x tile plus slack.
    in_bytes = 2 * tr * 128 * (albedo.dtype.itemsize + target_img.dtype.itemsize)
    vmem_limit = min(max(32 << 20, in_bytes + (8 << 20)), 128 << 20)

    # TODO(synk): if a profile still shows exposed DMA, add
    # pipeline_mode=pl.Buffered(3) on the a/t BlockSpecs (watch VMEM on v7x).
    partials = pl.pallas_call(
        _shade_loss_kernel,
        out_shape=jax.ShapeDtypeStruct((nsplit * 8, 128), jnp.float32),
        grid=(nsplit, nblk),
        in_specs=[
            pl.BlockSpec((tr, 128), lambda i, j: (i * nblk + j, 0)),
            pl.BlockSpec((tr, 128), lambda i, j: (i * nblk + j, 0)),
            pl.BlockSpec((8, 128), lambda i, j: (0, 0)),
        ],
        out_specs=pl.BlockSpec((8, 128), lambda i, j: (i, 0)),
        compiler_params=pltpu.CompilerParams(
            dimension_semantics=("parallel", "arbitrary"),
            vmem_limit_bytes=vmem_limit),
    )(a, t, scale_slab)

    # Final tiny cross-lane reduce done once, outside the hot loop.
    img_loss = jnp.sum(partials) / jnp.float32(n_elems)   # sum -> mean
    # Material regularizer: mean squared kd (C elements, trivial scalar glue).
    kd32 = kd.astype(jnp.float32)
    reg = jnp.mean(kd32 * kd32)
    return img_loss, reg


# --------------------------- module stand-ins --------------------------------

class Light:
    """Environment light.  build_mips() runs the whole 2x2 average-pool chain
    in a single fused Pallas kernel (see _make_mip_chain_kernel); the static
    pooling operators are built once here since the base shape is fixed."""

    def __init__(self, base):
        self.base = base                  # (He, We, C) environment map (params)
        self.mips = None
        He, We, C = base.shape
        self._C = C

        shapes = [(He, We)]
        while shapes[-1][0] >= 2 and shapes[-1][1] >= 2:
            shapes.append((shapes[-1][0] // 2, shapes[-1][1] // 2))
        self._level_shapes = shapes
        self._num_levels = len(shapes) - 1
        if self._num_levels == 0:
            return

        pad = [(max(_round_up(h, 8), 8), max(_round_up(w * C, 128), 128))
               for (h, w) in shapes]
        self._padded = pad

        A_list, B_list = [], []
        for l in range(self._num_levels):
            Hin, Win = shapes[l]
            Hout, Wout = shapes[l + 1]
            Hi_p, WCi_p = pad[l]
            Ho_p, WCo_p = pad[l + 1]
            # A_l[i, r] = 1 iff r in {2i, 2i+1}  (vertical pair-sum)
            r = jnp.arange(Hi_p)
            i = jnp.arange(Ho_p)
            A = ((r[None, :] // 2 == i[:, None])
                 & (r[None, :] < Hin) & (i[:, None] < Hout)).astype(jnp.float32)
            # B_l[k, m] = 1 iff k and m share the channel and k's W-group //2 == m's
            # W-group (horizontal pair-sum without mixing channels)
            k = jnp.arange(WCi_p)
            m = jnp.arange(WCo_p)
            B = (((k[:, None] // C) // 2 == m[None, :] // C)
                 & (k[:, None] % C == m[None, :] % C)
                 & (k[:, None] < Win * C)
                 & (m[None, :] < Wout * C)).astype(jnp.float32)
            A_list.append(A)
            B_list.append(B)
        self._A = A_list
        self._B = B_list
        self._kernel = _make_mip_chain_kernel(self._num_levels)
        self._out_shapes = tuple(jax.ShapeDtypeStruct(pad[l + 1], base.dtype)
                                 for l in range(self._num_levels))
        # TODO(synk): for very large env maps the B_l operators dominate VMEM;
        # a tiled / in-kernel roll-gather variant would be needed there.
        io_bytes = (pad[0][0] * pad[0][1] * base.dtype.itemsize
                    + sum(int(x.size) * 4 for x in A_list + B_list)
                    + sum(p[0] * p[1] * base.dtype.itemsize for p in pad[1:]))
        self._mip_vmem = (None if io_bytes < (24 << 20)
                          else min(int(io_bytes * 2) + (8 << 20), 120 << 20))

    def build_mips(self):
        if self._num_levels == 0:
            self.mips = [self.base]
            return
        He, We = self._level_shapes[0]
        C = self._C
        Hp0, WCp0 = self._padded[0]
        env2d = self.base.reshape(He, We * C)       # free contiguous view
        if (Hp0, WCp0) != (He, We * C):
            env2d = jnp.pad(env2d, ((0, Hp0 - He), (0, WCp0 - We * C)))
        kwargs = {}
        if self._mip_vmem is not None:
            kwargs["compiler_params"] = pltpu.CompilerParams(
                vmem_limit_bytes=self._mip_vmem)
        outs = pl.pallas_call(self._kernel, out_shape=self._out_shapes,
                              **kwargs)(env2d, *self._A, *self._B)
        mips = [self.base]
        for l in range(self._num_levels):
            H, W = self._level_shapes[l + 1]
            # padded regions are exact zeros; slice back to the true mip shape
            mips.append(outs[l][:H, :W * C].reshape(H, W, C))
        self.mips = mips

    def ambient(self):
        # tiny glue reduce of the coarsest mip -> per-channel ambient color
        return jnp.mean(self.mips[-1], axis=(0, 1))


class Material:
    def __init__(self, kd):
        self.kd = kd              # (C,) diffuse scale ("material parameters")


class Geometry:
    def __init__(self, albedo):
        # TODO(synk): nvdiffrast rasterization (glctx) has no Pallas
        # equivalent; geometry contributes a precomputed albedo G-buffer.
        self.albedo = albedo      # (B, H, W, C); fed bf16 for HBM bandwidth

    def tick(self, glctx, target, lgt, mat, image_loss_fn, it):
        img_loss, reg_loss = image_loss_fn(self.albedo, target['img'],
                                           mat.kd, lgt.ambient())
        reg_weight = jnp.minimum(jnp.float32(1.0), jnp.float32(it) / 500.0)
        return img_loss, reg_weight * reg_loss


class Trainer:
    def __init__(self, glctx, geometry, lgt, mat, optimize_geometry,
                 optimize_light, image_loss_fn, FLAGS):
        self.glctx = glctx
        self.geometry = geometry
        self.light = lgt
        self.material = mat
        self.optimize_geometry = optimize_geometry
        self.optimize_light = optimize_light
        self.image_loss_fn = image_loss_fn
        self.FLAGS = FLAGS
        if not self.optimize_light:
            self.light.build_mips()
        self.params = [self.material.kd]
        self.params += [self.light.base] if optimize_light else []
        self.geo_params = [self.geometry.albedo] if optimize_geometry else []

    def forward(self, target, it):
        if self.optimize_light:
            self.light.build_mips()
            if self.FLAGS.camera_space_light:
                # TODO(synk): light.xfm(target['mv']) (env-map rotation) not
                # implemented; no clean Pallas equivalent of the SH/env xfm.
                pass
        return self.geometry.tick(self.glctx, target, self.light,
                                  self.material, self.image_loss_fn, it)


# --------------------------------- main ---------------------------------------

if __name__ == "__main__":
    key = jax.random.PRNGKey(0)
    B, H, W, C = 2, 16, 16, 4
    He, We = 16, 32
    k1, k2, k3, k4 = jax.random.split(key, 4)

    # Rendered G-buffer and reference image are fed as bf16 slabs (halves the
    # memory-bound loss kernel's HBM traffic; the kernel upcasts to f32).
    albedo = jax.random.uniform(k1, (B, H, W, C), jnp.float32).astype(jnp.bfloat16)
    env = jax.random.uniform(k2, (He, We, C), jnp.float32)
    kd = jax.random.uniform(k3, (C,), jnp.float32) + 0.5
    target_img = jax.random.uniform(k4, (B, H, W, C), jnp.float32).astype(jnp.bfloat16)

    class FLAGS:
        camera_space_light = False

    trainer = Trainer(glctx=None,
                      geometry=Geometry(albedo),
                      lgt=Light(env),
                      mat=Material(kd),
                      optimize_geometry=True,
                      optimize_light=True,
                      image_loss_fn=shade_and_image_loss,
                      FLAGS=FLAGS)

    target = {'img': target_img, 'mv': jnp.eye(4, dtype=jnp.float32)}
    img_loss, reg_loss = trainer.forward(target, it=100)
    jax.block_until_ready((img_loss, reg_loss))
    print("KERNEL_OK")
</pallas_src>

<mosaic_0001>
module attributes {stable_mosaic.version = 11 : i64} {
  func.func @kernel(%arg0: memref<16x128xf32, #tpu.memory_space<vmem>>, %arg1: memref<8x16xf32, #tpu.memory_space<vmem>>, %arg2: memref<8x8xf32, #tpu.memory_space<vmem>>, %arg3: memref<8x8xf32, #tpu.memory_space<vmem>>, %arg4: memref<8x8xf32, #tpu.memory_space<vmem>>, %arg5: memref<128x128xf32, #tpu.memory_space<vmem>>, %arg6: memref<128x128xf32, #tpu.memory_space<vmem>>, %arg7: memref<128x128xf32, #tpu.memory_space<vmem>>, %arg8: memref<128x128xf32, #tpu.memory_space<vmem>>, %arg9: memref<8x128xf32, #tpu.memory_space<vmem>>, %arg10: memref<8x128xf32, #tpu.memory_space<vmem>>, %arg11: memref<8x128xf32, #tpu.memory_space<vmem>>, %arg12: memref<8x128xf32, #tpu.memory_space<vmem>>) attributes {dimension_semantics = [], scalar_prefetch = 0 : i64, scratch_operands = 0 : i64, tpu.core_type = #tpu.core_type<tc>} {
    %c0 = arith.constant 0 : index
    %c0_0 = arith.constant 0 : index
    %0 = vector.load %arg0[%c0, %c0_0] : memref<16x128xf32, #tpu.memory_space<vmem>>, vector<16x128xf32>
    %c0_1 = arith.constant 0 : index
    %c0_2 = arith.constant 0 : index
    %1 = vector.load %arg1[%c0_1, %c0_2] : memref<8x16xf32, #tpu.memory_space<vmem>>, vector<8x16xf32>
    %cst = arith.constant dense<0.000000e+00> : vector<8x128xf32>
    %2 = tpu.matmul %1, %0, %cst {dimension_numbers = #tpu.dot_dimension_numbers<[1], [0], [0], [1], [0, 0, 1, 1], [], []>} : vector<8x16xf32>, vector<16x128xf32>, vector<8x128xf32> -> vector<8x128xf32>
    %c0_3 = arith.constant 0 : index
    %c0_4 = arith.constant 0 : index
    %3 = vector.load %arg5[%c0_3, %c0_4] : memref<128x128xf32, #tpu.memory_space<vmem>>, vector<128x128xf32>
    %cst_5 = arith.constant dense<0.000000e+00> : vector<8x128xf32>
    %4 = tpu.matmul %2, %3, %cst_5 {dimension_numbers = #tpu.dot_dimension_numbers<[1], [0], [0], [1], [0, 0, 1, 1], [], []>} : vector<8x128xf32>, vector<128x128xf32>, vector<8x128xf32> -> vector<8x128xf32>
    %cst_6 = arith.constant 2.500000e-01 : f32
    %5 = vector.broadcast %cst_6 : f32 to vector<8x128xf32>
    %6 = arith.mulf %4, %5 : vector<8x128xf32>
    %c0_7 = arith.constant 0 : index
    %c0_8 = arith.constant 0 : index
    %7 = vector.load %arg9[%c0_7, %c0_8] : memref<8x128xf32, #tpu.memory_space<vmem>>, vector<8x128xf32>
    tpu.vector_store %arg9[%c0_7, %c0_8], %6 {strides = array<i32>} : memref<8x128xf32, #tpu.memory_space<vmem>>, vector<8x128xf32>,
    %c0_9 = arith.constant 0 : index
    %c0_10 = arith.constant 0 : index
    %8 = vector.load %arg2[%c0_9, %c0_10] : memref<8x8xf32, #tpu.memory_space<vmem>>, vector<8x8xf32>
    %cst_11 = arith.constant dense<0.000000e+00> : vector<8x128xf32>
    %9 = tpu.matmul %8, %6, %cst_11 {dimension_numbers = #tpu.dot_dimension_numbers<[1], [0], [0], [1], [0, 0, 1, 1], [], []>} : vector<8x8xf32>, vector<8x128xf32>, vector<8x128xf32> -> vector<8x128xf32>
    %c0_12 = arith.constant 0 : index
    %c0_13 = arith.constant 0 : index
    %10 = vector.load %arg6[%c0_12, %c0_13] : memref<128x128xf32, #tpu.memory_space<vmem>>, vector<128x128xf32>
    %cst_14 = arith.constant dense<0.000000e+00> : vector<8x128xf32>
    %11 = tpu.matmul %9, %10, %cst_14 {dimension_numbers = #tpu.dot_dimension_numbers<[1], [0], [0], [1], [0, 0, 1, 1], [], []>} : vector<8x128xf32>, vector<128x128xf32>, vector<8x128xf32> -> vector<8x128xf32>
    %cst_15 = arith.constant 2.500000e-01 : f32
    %12 = vector.broadcast %cst_15 : f32 to vector<8x128xf32>
    %13 = arith.mulf %11, %12 : vector<8x128xf32>
    %c0_16 = arith.constant 0 : index
    %c0_17 = arith.constant 0 : index
    %14 = vector.load %arg10[%c0_16, %c0_17] : memref<8x128xf32, #tpu.memory_space<vmem>>, vector<8x128xf32>
    tpu.vector_store %arg10[%c0_16, %c0_17], %13 {strides = array<i32>} : memref<8x128xf32, #tpu.memory_space<vmem>>, vector<8x128xf32>,
    %c0_18 = arith.constant 0 : index
    %c0_19 = arith.constant 0 : index
    %15 = vector.load %arg3[%c0_18, %c0_19] : memref<8x8xf32, #tpu.memory_space<vmem>>, vector<8x8xf32>
    %cst_20 = arith.constant dense<0.000000e+00> : vector<8x128xf32>
    %16 = tpu.matmul %15, %13, %cst_20 {dimension_numbers = #tpu.dot_dimension_numbers<[1], [0], [0], [1], [0, 0, 1, 1], [], []>} : vector<8x8xf32>, vector<8x128xf32>, vector<8x128xf32> -> vector<8x128xf32>
    %c0_21 = arith.constant 0 : index
    %c0_22 = arith.constant 0 : index
    %17 = vector.load %arg7[%c0_21, %c0_22] : memref<128x128xf32, #tpu.memory_space<vmem>>, vector<128x128xf32>
    %cst_23 = arith.constant dense<0.000000e+00> : vector<8x128xf32>
    %18 = tpu.matmul %16, %17, %cst_23 {dimension_numbers = #tpu.dot_dimension_numbers<[1], [0], [0], [1], [0, 0, 1, 1], [], []>} : vector<8x128xf32>, vector<128x128xf32>, vector<8x128xf32> -> vector<8x128xf32>
    %cst_24 = arith.constant 2.500000e-01 : f32
    %19 = vector.broadcast %cst_24 : f32 to vector<8x128xf32>
    %20 = arith.mulf %18, %19 : vector<8x128xf32>
    %c0_25 = arith.constant 0 : index
    %c0_26 = arith.constant 0 : index
    %21 = vector.load %arg11[%c0_25, %c0_26] : memref<8x128xf32, #tpu.memory_space<vmem>>, vector<8x128xf32>
    tpu.vector_store %arg11[%c0_25, %c0_26], %20 {strides = array<i32>} : memref<8x128xf32, #tpu.memory_space<vmem>>, vector<8x128xf32>,
    %c0_27 = arith.constant 0 : index
    %c0_28 = arith.constant 0 : index
    %22 = vector.load %arg4[%c0_27, %c0_28] : memref<8x8xf32, #tpu.memory_space<vmem>>, vector<8x8xf32>
    %cst_29 = arith.constant dense<0.000000e+00> : vector<8x128xf32>
    %23 = tpu.matmul %22, %20, %cst_29 {dimension_numbers = #tpu.dot_dimension_numbers<[1], [0], [0], [1], [0, 0, 1, 1], [], []>} : vector<8x8xf32>, vector<8x128xf32>, vector<8x128xf32> -> vector<8x128xf32>
    %c0_30 = arith.constant 0 : index
    %c0_31 = arith.constant 0 : index
    %24 = vector.load %arg8[%c0_30, %c0_31] : memref<128x128xf32, #tpu.memory_space<vmem>>, vector<128x128xf32>
    %cst_32 = arith.constant dense<0.000000e+00> : vector<8x128xf32>
    %25 = tpu.matmul %23, %24, %cst_32 {dimension_numbers = #tpu.dot_dimension_numbers<[1], [0], [0], [1], [0, 0, 1, 1], [], []>} : vector<8x128xf32>, vector<128x128xf32>, vector<8x128xf32> -> vector<8x128xf32>
    %cst_33 = arith.constant 2.500000e-01 : f32
    %26 = vector.broadcast %cst_33 : f32 to vector<8x128xf32>
    %27 = arith.mulf %25, %26 : vector<8x128xf32>
    %c0_34 = arith.constant 0 : index
    %c0_35 = arith.constant 0 : index
    %28 = vector.load %arg12[%c0_34, %c0_35] : memref<8x128xf32, #tpu.memory_space<vmem>>, vector<8x128xf32>
    tpu.vector_store %arg12[%c0_34, %c0_35], %27 {strides = array<i32>} : memref<8x128xf32, #tpu.memory_space<vmem>>, vector<8x128xf32>,
    return
  }
}

</mosaic_0001>

<bundles_post_ra>
// kernel: tpu_custom_call.1
= control target key start
LH: loop header
LB: loop body
LE: loop exit
PB: predicated region body
PF: predicated region fallthrough
CT: control target
= control target key end

     0   :  { %18 = vsyncpa [#allocation3], 0  ;;  %s975_s0 = inlined_call_operand.hbm [shape: f32[16,128], index: 0, kind: input, shape index: {}]   ;;  %s976_s1 = inlined_call_operand.hbm [shape: f32[8,16], index: 1, kind: input, shape index: {}]   ;;  %s977_s2 = inlined_call_operand.hbm [shape: f32[8,8], index: 2, kind: input, shape index: {}]   ;;  %s978_s3 = inlined_call_operand.hbm [shape: f32[8,8], index: 3, kind: input, shape index: {}]   ;;  %s979_s4 = inlined_call_operand.hbm [shape: f32[8,8], index: 4, kind: input, shape index: {}]   ;;  %s980_s5 = inlined_call_operand.hbm [shape: f32[128,128], index: 5, kind: input, shape index: {}]   ;;  %s981_s6 = inlined_call_operand.hbm [shape: f32[128,128], index: 6, kind: input, shape index: {}]   ;;  %s982_s7 = inlined_call_operand.hbm [shape: f32[128,128], index: 7, kind: input, shape index: {}]   ;;  %s983_s8 = inlined_call_operand.hbm [shape: f32[128,128], index: 8, kind: input, shape index: {}]   ;;  %s984_s9 = inlined_call_operand.hbm [shape: f32[8,128], index: 9, kind: output, shape index: {0}]   ;;  %s985_s10 = inlined_call_operand.hbm [shape: f32[8,128], index: 10, kind: output, shape index: {1}]   ;;  %s986_s11 = inlined_call_operand.hbm [shape: f32[8,128], index: 11, kind: output, shape index: {2}]   ;;  %s987_s12 = inlined_call_operand.hbm [shape: f32[8,128], index: 12, kind: output, shape index: {3}]  }
   0x1   :  { %19 = vsyncpa [#allocation6], 0 }
   0x2   :  { %20 = vsyncpa [#allocation9], 0 }
   0x3   :  { %21 = vsyncpa [#allocation12], 0 }
   0x4   :  { %22 = vsyncpa [#allocation15], 0 }
   0x5   :  { %23 = vsyncpa [#allocation4], 0 }
   0x6   :  { %24 = vsyncpa [#allocation19], 0  ;;  %s44_s23 = sshll.u32 %s976_s1, 4  ;;  %s45_s23 = int_to_ptr.hbm [resolvable:$true] %s44_s23 }
   0x7   :  { %25 = vsyncpa [#allocation22], 0  ;;  %s838_s24 = smov [#allocation5]   ;;  %s66_s28 = sshll.u32 %s978_s3, 4  ;;  %s67_s28 = int_to_ptr.hbm [resolvable:$true] %s66_s28 }
   0x8   :  { %s46_s25 = sshll.u32 %s838_s24, 4  ;;  %s839_s29 = smov [#allocation8]   ;;  %s47_s25 = int_to_ptr.vmem [resolvable:$true] %s46_s25 }
   0x9   :  { %49 = dma.hbm_to_vmem [thread:$0]  %s45_s23, 128, %s47_s25, [#allocation6]  }
   0xa   :  { %s68_s30 = sshll.u32 %s839_s29, 4  ;;  %s87_s15 = sshll.u32 %s980_s5, 4  ;;  %s69_s30 = int_to_ptr.vmem [resolvable:$true] %s68_s30  ;;  %s88_s15 = int_to_ptr.hbm [resolvable:$true] %s87_s15 }
   0xb   :  { %71 = dma.hbm_to_vmem [thread:$0]  %s67_s28, 128, %s69_s30, [#allocation9]  }
   0xc   :  { %s840_s1 = smov [#allocation11]   ;;  %s113_s19 = sshll.u32 %s982_s7, 4  ;;  %s114_s19 = int_to_ptr.hbm [resolvable:$true] %s113_s19 }
   0xd   :  { %s89_s16 = sshll.u32 %s840_s1, 4  ;;  %s841_s20 = smov 128   ;;  %s90_s16 = int_to_ptr.vmem [resolvable:$true] %s89_s16 }
   0xe   :  { %s842_s3 = smov 8   ;;  %s843_s21 = smov [#allocation14]  }
   0xf   :  { %95 = dma.hbm_to_vmem [thread:$0]  %s88_s15, 2048, %s90_s16, [#allocation12], %s841_s20, %s841_s20, %s842_s3  }
  0x10   :  { %s115_s22 = sshll.u32 %s843_s21, 4  ;;  %s30_s5 = sshll.u32 %s975_s0, 4  ;;  %s116_s22 = int_to_ptr.vmem [resolvable:$true] %s115_s22  ;;  %s31_s5 = int_to_ptr.hbm [resolvable:$true] %s30_s5 }
  0x11   :  { %121 = dma.hbm_to_vmem [thread:$0]  %s114_s19, 2048, %s116_s22, [#allocation15], %s841_s20, %s841_s20, %s842_s3  }
  0x12   :  { %s55_s26 = sshll.u32 %s977_s2, 4  ;;  %s844_s27 = smov [#allocation2]   ;;  %s56_s26 = int_to_ptr.hbm [resolvable:$true] %s55_s26 }
  0x13   :  { %s32_s28 = sshll.u32 %s844_s27, 4  ;;  %s845_s29 = smov [#allocation7]   ;;  %s33_s28 = int_to_ptr.vmem [resolvable:$true] %s32_s28 }
  0x14   :  { %38 = dma.hbm_to_vmem [thread:$0]  %s31_s5, 256, %s33_s28, [#allocation3], %s841_s20, %s841_s20, %s842_s3  }
  0x15   :  { %s57_s0 = sshll.u32 %s845_s29, 4  ;;  %s77_s14 = sshll.u32 %s979_s4, 4  ;;  %s58_s0 = int_to_ptr.vmem [resolvable:$true] %s57_s0  ;;  %s78_s14 = int_to_ptr.hbm [resolvable:$true] %s77_s14 }
  0x16   :  { %60 = dma.hbm_to_vmem [thread:$0]  %s56_s26, 128, %s58_s0, [#allocation6]  }
  0x17   :  { %s100_s2 = sshll.u32 %s981_s6, 4  ;;  %s846_s16 = smov [#allocation10]   ;;  %s101_s2 = int_to_ptr.hbm [resolvable:$true] %s100_s2 }
  0x18   :  { %s79_s17 = sshll.u32 %s846_s16, 4  ;;  %s847_s18 = smov [#allocation13]   ;;  %s80_s17 = int_to_ptr.vmem [resolvable:$true] %s79_s17 }
  0x19   :  { %82 = dma.hbm_to_vmem [thread:$0]  %s78_s14, 128, %s80_s17, [#allocation9]  }
  0x1a   :  { %s102_s19 = sshll.u32 %s847_s18, 4  ;;  %s126_s23 = sshll.u32 %s983_s8, 4  ;;  %s103_s19 = int_to_ptr.vmem [resolvable:$true] %s102_s19  ;;  %s127_s23 = int_to_ptr.hbm [resolvable:$true] %s126_s23 }
  0x1b   :  { %108 = dma.hbm_to_vmem [thread:$0]  %s101_s2, 2048, %s103_s19, [#allocation12], %s841_s20, %s841_s20, %s842_s3  }
  0x1c   :  { %s848_s4 = smov [#allocation16]  }
  0x1d   :  { %s128_s24 = sshll.u32 %s848_s4, 4  ;;  %s129_s24 = int_to_ptr.vmem [resolvable:$true] %s128_s24 }
  0x1e   :  { %134 = dma.hbm_to_vmem [thread:$0]  %s127_s23, 2048, %s129_s24, [#allocation15], %s841_s20, %s841_s20, %s842_s3  }
  0x1f   :  { %822 = dma.done.wait [#allocation3], 256  }
  0x20   :  { %823 = vsyncadd [#allocation3], 4294967040 }
  0x21   :  { %824 = dma.done.wait [#allocation6], 256  }
  0x22   :  { %825 = vsyncadd [#allocation6], 4294967040 }
  0x23   :  { %826 = dma.done.wait [#allocation9], 256  }
  0x24   :  { %827 = vsyncadd [#allocation9], 4294967040 }
  0x25   :  { %828 = dma.done.wait [#allocation12], 4096  }
  0x26   :  { %829 = vsyncadd [#allocation12], 4294963200 }
  0x27   :  { %830 = dma.done.wait [#allocation15], 4096  }
  0x28   :  { %831 = vsyncadd [#allocation15], 4294963200  ;;  %v172_v0 = vld [vmem:[#allocation2 + $0x8] sm:$0xff]  ;;  %v171_v1 = vld [vmem:[#allocation2] sm:$0xff]  ;;  %vm174_vm0 = vcmask 130048   ;;  %vm237_vm1 = vcmask 64512  }
  0x29   :  { %192 = vmatpush.msra.mxu0 %v172_v0  ;;  %v173_v2 = vld [vmem:[#allocation5] sm:$0xff]  ;;  %v213_v3 = vld [vmem:[#allocation11 + $0x78] sm:$0xff]  ;;  %v212_v4 = vld [vmem:[#allocation11 + $0x70] sm:$0xff]  ;;  %s849_s6 = smov [#allocation18]   ;;  %s441_s5 = sshll.u32 %s985_s10, 4  ;;  %s442_s5 = int_to_ptr.hbm [resolvable:$true] %s441_s5 }
  0x2a   :  { %214 = vmatpush.msra.mxu1 %v213_v3  ;;  %v211_v5 = vld [vmem:[#allocation11 + $0x68] sm:$0xff]  ;;  %v210_v6 = vld [vmem:[#allocation11 + $0x60] sm:$0xff]  ;;  %v209_v7 = vld [vmem:[#allocation11 + $0x58] sm:$0xff]  ;;  %s439_s8 = sshll.u32 %s849_s6, 4  ;;  %s430_s26 = sshll.u32 %s984_s9, 4  ;;  %s440_s8 = int_to_ptr.vmem [resolvable:$true] %s439_s8  ;;  %s431_s26 = int_to_ptr.hbm [resolvable:$true] %s430_s26 }
  0x2b   :  { %193 = vmatpush.msra.mxu0 %v171_v1  ;;  %v208_v8 = vld [vmem:[#allocation11 + $0x50] sm:$0xff]  ;;  %v207_v9 = vld [vmem:[#allocation11 + $0x48] sm:$0xff]  ;;  %v206_v10 = vld [vmem:[#allocation11 + $0x40] sm:$0xff]  ;;  %s850_s27 = smov [#allocation17]   ;;  %s851_s29 = smov [#allocation20]  }
  0x2c   :  { %491 = vmatmul.msk.f32.vlgmr.msra.gmra.mxu0 %vm174_vm0, %v173_v2  ;;  %215 = vmatpush.msra.mxu1 %v212_v4  ;;  %v205_v11 = vld [vmem:[#allocation11 + $0x38] sm:$0xff]  ;;  %v204_v12 = vld [vmem:[#allocation11 + $0x30] sm:$0xff]  ;;  %v203_v13 = vld [vmem:[#allocation11 + $0x28] sm:$0xff]  ;;  %s428_s28 = sshll.u32 %s850_s27, 4  ;;  %s450_s0 = sshll.u32 %s851_s29, 4  ;;  %s429_s28 = int_to_ptr.vmem [resolvable:$true] %s428_s28  ;;  %s451_s0 = int_to_ptr.vmem [resolvable:$true] %s450_s0 }
  0x2d   :  { %v202_v14 = vld [vmem:[#allocation11 + $0x20] sm:$0xff]  ;;  %v201_v15 = vld [vmem:[#allocation11 + $0x18] sm:$0xff]  ;;  %v200_v16 = vld [vmem:[#allocation11 + $0x10] sm:$0xff]  ;;  %s452_s14 = sshll.u32 %s986_s11, 4  ;;  %s852_s10 = smov [#allocation21]   ;;  %s453_s14 = int_to_ptr.hbm [resolvable:$true] %s452_s14 }
  0x2e   :  { %216 = vmatpush.msra.mxu1 %v211_v5  ;;  %v199_v17 = vld [vmem:[#allocation11 + $0x8] sm:$0xff]  ;;  %v198_v18 = vld [vmem:[#allocation11] sm:$0xff]  ;;  %v276_v20 = vld [vmem:[#allocation13 + $0x78] sm:$0xff]  ;;  %s461_s15 = sshll.u32 %s852_s10, 4  ;;  %s463_s9 = sshll.u32 %s987_s12, 4  ;;  %s462_s15 = int_to_ptr.vmem [resolvable:$true] %s461_s15  ;;  %s464_s9 = int_to_ptr.hbm [resolvable:$true] %s463_s9 }
  0x2f   :  { %v275_v21 = vld [vmem:[#allocation13 + $0x70] sm:$0xff]  ;;  %277 = vmatpush.msra.mxu3 %v276_v20  ;;  %v274_v22 = vld [vmem:[#allocation13 + $0x68] sm:$0xff]  ;;  %v273_v23 = vld [vmem:[#allocation13 + $0x60] sm:$0xff] }
  0x30   :  { %217 = vmatpush.msra.mxu1 %v210_v6  ;;  %v272_v24 = vld [vmem:[#allocation13 + $0x58] sm:$0xff]  ;;  %v271_v25 = vld [vmem:[#allocation13 + $0x50] sm:$0xff]  ;;  %v270_v26 = vld [vmem:[#allocation13 + $0x48] sm:$0xff] }
  0x31   :  { %278 = vmatpush.msra.mxu3 %v275_v21  ;;  %v269_v27 = vld [vmem:[#allocation13 + $0x40] sm:$0xff]  ;;  %v268_v28 = vld [vmem:[#allocation13 + $0x38] sm:$0xff]  ;;  %v267_v29 = vld [vmem:[#allocation13 + $0x30] sm:$0xff] }
  0x32   :  { %218 = vmatpush.msra.mxu1 %v209_v7  ;;  %v266_v30 = vld [vmem:[#allocation13 + $0x28] sm:$0xff]  ;;  %v265_v31 = vld [vmem:[#allocation13 + $0x20] sm:$0xff]  ;;  %v264_v32 = vld [vmem:[#allocation13 + $0x18] sm:$0xff] }
  0x33   :  { %279 = vmatpush.msra.mxu3 %v274_v22  ;;  %v263_v33 = vld [vmem:[#allocation13 + $0x10] sm:$0xff]  ;;  %v262_v34 = vld [vmem:[#allocation13 + $0x8] sm:$0xff]  ;;  %v261_v38 = vld [vmem:[#allocation13] sm:$0xff] }
  0x34   :  { %219 = vmatpush.msra.mxu1 %v208_v8  ;;  %v236_v37 = vld [vmem:[#allocation7] sm:$0xff]  ;;  %v338_v40 = vld [vmem:[#allocation14 + $0x78] sm:$0xff]  ;;  %v337_v41 = vld [vmem:[#allocation14 + $0x70] sm:$0xff] }
  0x35   :  { %280 = vmatpush.msra.mxu3 %v273_v23  ;;  %339 = vmatpush.msrb.mxu0 %v338_v40  ;;  %v336_v42 = vld [vmem:[#allocation14 + $0x68] sm:$0xff]  ;;  %v335_v43 = vld [vmem:[#allocation14 + $0x60] sm:$0xff]  ;;  %v334_v44 = vld [vmem:[#allocation14 + $0x58] sm:$0xff] }
  0x36   :  { %220 = vmatpush.msra.mxu1 %v207_v9  ;;  %v333_v45 = vld [vmem:[#allocation14 + $0x50] sm:$0xff]  ;;  %v332_v46 = vld [vmem:[#allocation14 + $0x48] sm:$0xff]  ;;  %v331_v47 = vld [vmem:[#allocation14 + $0x40] sm:$0xff] }
  0x37   :  { %281 = vmatpush.msra.mxu3 %v272_v24  ;;  %340 = vmatpush.msrb.mxu0 %v337_v41  ;;  %v330_v48 = vld [vmem:[#allocation14 + $0x38] sm:$0xff]  ;;  %v329_v49 = vld [vmem:[#allocation14 + $0x30] sm:$0xff]  ;;  %v328_v50 = vld [vmem:[#allocation14 + $0x28] sm:$0xff] }
  0x38   :  { %221 = vmatpush.msra.mxu1 %v206_v10  ;;  %v327_v51 = vld [vmem:[#allocation14 + $0x20] sm:$0xff]  ;;  %v326_v52 = vld [vmem:[#allocation14 + $0x18] sm:$0xff]  ;;  %v325_v53 = vld [vmem:[#allocation14 + $0x10] sm:$0xff] }
  0x39   :  { %282 = vmatpush.msra.mxu3 %v271_v25  ;;  %341 = vmatpush.msrb.mxu0 %v336_v42  ;;  %v324_v54 = vld [vmem:[#allocation14 + $0x8] sm:$0xff]  ;;  %v299_v57 = vld [vmem:[#allocation8] sm:$0xff]  ;;  %v323_v58 = vld [vmem:[#allocation14] sm:$0xff] }
  0x3a   :  { %222 = vmatpush.msra.mxu1 %v205_v11  ;;  %v361_v62 = vld [vmem:[#allocation10] sm:$0xff]  ;;  %v399_v0 = vld [vmem:[#allocation16 + $0x70] sm:$0xff]  ;;  %v398_v1 = vld [vmem:[#allocation16 + $0x68] sm:$0xff] }
  0x3b   :  { %283 = vmatpush.msra.mxu3 %v270_v26  ;;  %342 = vmatpush.msrb.mxu0 %v335_v43  ;;  %v400_v63 = vld [vmem:[#allocation16 + $0x78] sm:$0xff]  ;;  %v397_v2 = vld [vmem:[#allocation16 + $0x60] sm:$0xff]  ;;  %v395_v4 = vld [vmem:[#allocation16 + $0x50] sm:$0xff] }
  0x3c   :  { %223 = vmatpush.msra.mxu1 %v204_v12  ;;  %v396_v3 = vld [vmem:[#allocation16 + $0x58] sm:$0xff]  ;;  %v394_v5 = vld [vmem:[#allocation16 + $0x48] sm:$0xff]  ;;  %v393_v6 = vld [vmem:[#allocation16 + $0x40] sm:$0xff] }
  0x3d   :  { %284 = vmatpush.msra.mxu3 %v269_v27  ;;  %343 = vmatpush.msrb.mxu0 %v334_v44  ;;  %v392_v7 = vld [vmem:[#allocation16 + $0x38] sm:$0xff]  ;;  %v391_v8 = vld [vmem:[#allocation16 + $0x30] sm:$0xff]  ;;  %v390_v9 = vld [vmem:[#allocation16 + $0x28] sm:$0xff] }
  0x3e   :  { %224 = vmatpush.msra.mxu1 %v203_v13  ;;  %v389_v10 = vld [vmem:[#allocation16 + $0x20] sm:$0xff]  ;;  %v388_v11 = vld [vmem:[#allocation16 + $0x18] sm:$0xff]  ;;  %v387_v12 = vld [vmem:[#allocation16 + $0x10] sm:$0xff] }
  0x3f   :  { %285 = vmatpush.msra.mxu3 %v268_v28  ;;  %344 = vmatpush.msrb.mxu0 %v333_v45  ;;  %v386_v13 = vld [vmem:[#allocation16 + $0x8] sm:$0xff] }
  0x40   :  { %225 = vmatpush.msra.mxu1 %v202_v14  ;;  %v385_v14 = vld [vmem:[#allocation16] sm:$0xff] }
  0x41   :  { %286 = vmatpush.msra.mxu3 %v267_v29  ;;  %345 = vmatpush.msrb.mxu0 %v332_v46 }
  0x42   :  { %226 = vmatpush.msra.mxu1 %v201_v15 }
  0x43   :  { %287 = vmatpush.msra.mxu3 %v266_v30  ;;  %346 = vmatpush.msrb.mxu0 %v331_v47 }
  0x44   :  { %227 = vmatpush.msra.mxu1 %v200_v16 }
  0x45   :  { %288 = vmatpush.msra.mxu3 %v265_v31  ;;  %347 = vmatpush.msrb.mxu0 %v330_v48 }
  0x46   :  { %228 = vmatpush.msra.mxu1 %v199_v17 }
  0x47   :  { %289 = vmatpush.msra.mxu3 %v264_v32  ;;  %348 = vmatpush.msrb.mxu0 %v329_v49 }
  0x48   :  { %229 = vmatpush.msra.mxu1 %v198_v18 }
  0x49   :  { %290 = vmatpush.msra.mxu3 %v263_v33  ;;  %349 = vmatpush.msrb.mxu0 %v328_v50 }
  0x4b   :  { %291 = vmatpush.msra.mxu3 %v262_v34  ;;  %350 = vmatpush.msrb.mxu0 %v327_v51 }
  0x4d   :  { %292 = vmatpush.msra.mxu3 %v261_v38  ;;  %351 = vmatpush.msrb.mxu0 %v326_v52 }
  0x4f   :  { %352 = vmatpush.msrb.mxu0 %v325_v53 }
  0x51   :  { %353 = vmatpush.msrb.mxu0 %v324_v54 }
  0x53   :  { %354 = vmatpush.msrb.mxu0 %v323_v58 }
  0xa9   :  { %v195_v19 = vpop.f32.mrf.mxu0 }
  0xaa   :  { %230 = vmatmul.f32.vlgmr.msra.gmra.mxu1 %v195_v19 }
 0x127   :  { %v231_v35 = vpop.f32.mrf.mxu1 }
 0x128   :  { %v234_v36 = vmul.f32 0.25, %v231_v35 }
 0x12a   :  { %235 = vst [vmem:[#allocation17] sm:$0xff] %v234_v36  ;;  %256 = vmatpush.msrb.mxu1 %v234_v36 }
 0x12b   :  { %492 = vmatmul.msk.f32.vlgmr.msrb.gmra.mxu1 %vm237_vm1, %v236_v37  ;;  %433 = dma.vmem_to_hbm [thread:$0]  %s429_s28, 128, %s431_s26, [#allocation4]  }
 0x1a8   :  { %v258_v39 = vpop.f32.mrf.mxu1 }
 0x1a9   :  { %293 = vmatmul.f32.vlgmr.msra.gmra.mxu3 %v258_v39 }
 0x22c   :  { %v294_v55 = vpop.f32.mrf.mxu3 }
 0x22d   :  { %v297_v56 = vmul.f32 0.25, %v294_v55 }
 0x22f   :  { %298 = vst [vmem:[#allocation18] sm:$0xff] %v297_v56  ;;  %318 = vmatpush.msrb.mxu3 %v297_v56 }
 0x230   :  { %493 = vmatmul.msk.f32.vlgmr.msrb.gmra.mxu3 %vm237_vm1, %v299_v57  ;;  %444 = dma.vmem_to_hbm [thread:$0]  %s440_s8, 128, %s442_s5, [#allocation19]  }
 0x2b3   :  { %v320_v59 = vpop.f32.mrf.mxu3 }
 0x2b4   :  { %355 = vmatmul.f32.vlgmr.msrb.gmra.mxu0 %v320_v59 }
 0x331   :  { %v356_v60 = vpop.f32.mrf.mxu0 }
 0x332   :  { %v359_v61 = vmul.f32 0.25, %v356_v60 }
 0x334   :  { %360 = vst [vmem:[#allocation20] sm:$0xff] %v359_v61  ;;  %380 = vmatpush.msra.mxu2 %v359_v61 }
 0x335   :  { %494 = vmatmul.msk.f32.vlgmr.msra.gmra.mxu2 %vm237_vm1, %v361_v62  ;;  %455 = dma.vmem_to_hbm [thread:$0]  %s451_s0, 128, %s453_s14, [#allocation19]  }
 0x336   :  { %401 = vmatpush.msrb.mxu2 %v400_v63 }
 0x338   :  { %402 = vmatpush.msrb.mxu2 %v399_v0 }
 0x33a   :  { %403 = vmatpush.msrb.mxu2 %v398_v1 }
 0x33c   :  { %404 = vmatpush.msrb.mxu2 %v397_v2 }
 0x33e   :  { %405 = vmatpush.msrb.mxu2 %v396_v3 }
 0x340   :  { %406 = vmatpush.msrb.mxu2 %v395_v4 }
 0x342   :  { %407 = vmatpush.msrb.mxu2 %v394_v5 }
 0x344   :  { %408 = vmatpush.msrb.mxu2 %v393_v6 }
 0x346   :  { %409 = vmatpush.msrb.mxu2 %v392_v7 }
 0x348   :  { %410 = vmatpush.msrb.mxu2 %v391_v8 }
 0x34a   :  { %411 = vmatpush.msrb.mxu2 %v390_v9 }
 0x34c   :  { %412 = vmatpush.msrb.mxu2 %v389_v10 }
 0x34e   :  { %413 = vmatpush.msrb.mxu2 %v388_v11 }
 0x350   :  { %414 = vmatpush.msrb.mxu2 %v387_v12 }
 0x352   :  { %415 = vmatpush.msrb.mxu2 %v386_v13 }
 0x354   :  { %416 = vmatpush.msrb.mxu2 %v385_v14 }
 0x3b8   :  { %v382_v15 = vpop.f32.mrf.mxu2 }
 0x3b9   :  { %417 = vmatmul.f32.vlgmr.msrb.gmra.mxu2 %v382_v15 }
 0x43c   :  { %v418_v16 = vpop.f32.mrf.mxu2 }
 0x43d   :  { %v421_v17 = vmul.f32 0.25, %v418_v16 }
 0x43f   :  { %422 = vst [vmem:[#allocation21] sm:$0xff] %v421_v17 }
 0x440   :  { %466 = dma.vmem_to_hbm [thread:$0]  %s462_s15, 128, %s464_s9, [#allocation22]  }
 0x441   :  { %832 = dma.done.wait [#allocation4], 128  }
 0x442   :  { %833 = vsyncadd [#allocation4], 4294967168 }
 0x443   :  { %834 = dma.done.wait [#allocation19], 256  }
 0x444   :  { %835 = vsyncadd [#allocation19], 4294967040 }
 0x445   :  { %836 = dma.done.wait [#allocation22], 128  }
 0x446   :  { %837 = vsyncadd [#allocation22], 4294967168 }
 0x447   :  { %483 = vsyncpa [#allocation3], 1 }
 0x448   :  { %484 = vsyncpa [#allocation6], 1 }
 0x449   :  { %485 = vsyncpa [#allocation9], 1 }
 0x44a   :  { %486 = vsyncpa [#allocation12], 1 }
 0x44b   :  { %487 = vsyncpa [#allocation15], 1 }
 0x44c   :  { %488 = vsyncpa [#allocation4], 1 }
 0x44d   :  { %489 = vsyncpa [#allocation19], 1 }
 0x44e   :  { %490 = vsyncpa [#allocation22], 1 }

</bundles_post_ra>
